<compile_context>
chip_gen: v7x
topology: tpu7x:2x2x1
jax: 0.10.0
libtpu: 0.0.40
codegen_flags: <defaults>
</compile_context>

<pallas_src>
import functools

import jax
import jax.numpy as jnp
from jax.experimental import pallas as pl
from jax.experimental.pallas import tpu as pltpu


_LANE = 128


# ----------------------------------------------------------------------------
# Generation-dependent VMEM budgets
# ----------------------------------------------------------------------------
def _tpu_vmem_capacity_bytes():
    try:
        info = pltpu.get_tpu_info()
        for attr in ("vmem_capacity_bytes", "vmem_bytes", "vmem_size_bytes"):
            v = getattr(info, attr, None)
            if v:
                return int(v)
    except Exception:
        pass
    return 64 * 1024 * 1024          # conservative default (v7x per-core VMEM)


_VMEM_CAP = _tpu_vmem_capacity_bytes()
# ~105 MiB on v5e/v6e (128 MiB physical), ~52 MiB on v7x (64 MiB per core).
_VMEM_LIMIT = min(int(_VMEM_CAP * 0.82), _VMEM_CAP - (8 << 20))
# Fused path holds 2x input + 2x output blocks (double-buffered) -> /4.
_FUSED_X_BUDGET = max((_VMEM_LIMIT - (4 << 20)) // 4, 2 << 20)
# Apply pass streams in + out (double-buffered) -> /4, capped to keep >=2 steps.
_APPLY_X_BUDGET = max(min(_FUSED_X_BUDGET, 16 << 20), 2 << 20)
# Pooling pass has no output slab -> only 2x input blocks.
_POOL_X_BUDGET = max(min((_VMEM_LIMIT - (4 << 20)) // 2, 32 << 20), 2 << 20)


# ----------------------------------------------------------------------------
# Kernels
# ----------------------------------------------------------------------------
def _se_fused_kernel(x_ref, wd_ref, bd_ref, wu_ref, bu_ref, o_ref, s_ref,
                     *, inv_hw, nb, c):
    """One-shot: pool -> excite -> scale for a (nb*C, HW) block (single x read)."""
    x = x_ref[...]                                               # native dtype
    # squeeze: f32 spatial mean per (n, c) row (reduce widens per-vreg, no copy)
    pooled = jnp.sum(x, axis=-1, keepdims=True, dtype=jnp.float32) * inv_hw
    # excitation: per-batch matvecs against the original tiny weights (no kron)
    for n in range(nb):                                          # nb is static
        p_n = pooled[n * c:(n + 1) * c, :]                       # (C, 1) f32
        h = jnp.dot(wd_ref[...], p_n,
                    preferred_element_type=jnp.float32) + bd_ref[...]
        h = jnp.where(h >= 0.0, h, 0.01 * h)                     # leaky_relu(0.01)
        s_n = jnp.dot(wu_ref[...], h,
                      preferred_element_type=jnp.float32) + bu_ref[...]
        s_ref[n * c:(n + 1) * c, :] = jax.nn.sigmoid(s_n)        # (C, 1) f32
    # scale in the input's native dtype (no f32 copy of the slab)
    o_ref[...] = x * s_ref[...].astype(o_ref.dtype)


def _se_pool_kernel(x_ref, p_ref, acc_ref, *, inv_hw):
    """Tiled pass 1: accumulate the spatial sum across HW tiles (f32)."""
    h_idx = pl.program_id(1)

    @pl.when(h_idx == 0)
    def _init():
        acc_ref[...] = jnp.zeros_like(acc_ref)

    acc_ref[...] += jnp.sum(x_ref[...], axis=-1, keepdims=True, dtype=jnp.float32)

    @pl.when(h_idx == pl.num_programs(1) - 1)
    def _finalize():
        p_ref[...] = acc_ref[...] * inv_hw                       # (rows, 1) f32


def _se_apply_kernel(x_ref, s_ref, o_ref):
    """Tiled pass 2: pure mem-bound broadcast scale, native dtype."""
    o_ref[...] = x_ref[...] * s_ref[...].astype(o_ref.dtype)


# ----------------------------------------------------------------------------
# Block-size selection helpers (all static / trace-time)
# ----------------------------------------------------------------------------
def _sublane_multiple(itemsize):
    return {4: 8, 2: 16, 1: 32}.get(int(itemsize), 8)


def _round_up(v, m):
    return (v + m - 1) // m * m


def _pick_nb(n, c, cols, itemsize, budget, max_nb=None):
    """Batches per block.  rows = nb*C must be a (dtype-aware) sublane multiple
    or cover the full N*C extent; nb must divide N and fit the byte budget."""
    sub = _sublane_multiple(itemsize)
    legal = [d for d in range(1, n + 1)
             if n % d == 0 and ((d * c) % sub == 0 or d == n)]
    if max_nb is not None:
        capped = [d for d in legal if d <= max_nb] or [min(legal)]
    else:
        capped = legal
    fitting = [d for d in capped if d * c * cols * itemsize <= budget]
    if not fitting:
        # TODO(synk): pathological shape (tiny non-aligned C whose smallest legal
        # block is over budget); callers re-route to the tiled path in that case.
        return min(capped)
    filled = [d for d in fitting if d * c >= sub] or fitting     # sublane fill
    multi = [d for d in filled if n // d >= 2] or filled         # >=2 grid blocks
    return max(multi)                                            # amortize steps


def _pick_hw_tile(hw_pad, c, itemsize, budget):
    """Largest 128-multiple spatial tile dividing the padded HW within budget."""
    for t in (16384, 8192, 4096, 2048, 1024, 512, 256, 128):
        if hw_pad % t == 0 and c * t * itemsize <= budget:
            return t
    return 128


# ----------------------------------------------------------------------------
# Wrapper
# ----------------------------------------------------------------------------
@functools.partial(jax.jit, static_argnames=("force_tiled", "hw_tile"))
def se_block(x_nchw, w_down, b_down, w_up, b_up, *, force_tiled=False, hw_tile=None):
    """x: (N, C, H, W); w_down: (I, C); b_down: (I,); w_up: (C, I); b_up: (C,)."""
    N, C, H, W = x_nchw.shape
    i_dim = w_down.shape[0]
    HW = H * W
    itemsize = jnp.dtype(x_nchw.dtype).itemsize
    inv_hw = 1.0 / float(HW)

    if hw_tile is not None and (hw_tile <= 0 or hw_tile % _LANE != 0):
        raise ValueError(f"hw_tile must be a positive multiple of {_LANE}")

    x = x_nchw.reshape(N * C, HW)             # free reshape (contiguous NCHW)

    # Route to the single-HBM-read fused path whenever a batch slab fits VMEM.
    use_fused = (not force_tiled) and (hw_tile is None) \
        and C * HW * itemsize <= _FUSED_X_BUDGET

    if use_fused:
        nb = _pick_nb(N, C, HW, itemsize, _FUSED_X_BUDGET, max_nb=16)
        if nb * C * HW * itemsize > _FUSED_X_BUDGET:
            use_fused = False                 # never exceed the budget: go tiled

    # ------------------------------------------------------------------ fused
    if use_fused:
        rows = nb * C
        wd = w_down.astype(jnp.float32)                       # (I, C)
        bd = b_down.reshape(-1, 1).astype(jnp.float32)        # (I, 1)
        wu = w_up.astype(jnp.float32)                         # (C, I)
        bu = b_up.reshape(-1, 1).astype(jnp.float32)          # (C, 1)

        kernel = functools.partial(_se_fused_kernel, inv_hw=inv_hw, nb=nb, c=C)
        out = pl.pallas_call(
            kernel,
            out_shape=jax.ShapeDtypeStruct((N * C, HW), x.dtype),
            grid_spec=pltpu.PrefetchScalarGridSpec(
                num_scalar_prefetch=0,
                grid=(N // nb,),
                in_specs=[
                    pl.BlockSpec((rows, HW), lambda n: (n, 0)),
                    pl.BlockSpec((i_dim, C), lambda n: (0, 0)),
                    pl.BlockSpec((i_dim, 1), lambda n: (0, 0)),
                    pl.BlockSpec((C, i_dim), lambda n: (0, 0)),
                    pl.BlockSpec((C, 1), lambda n: (0, 0)),
                ],
                out_specs=pl.BlockSpec((rows, HW), lambda n: (n, 0)),
                scratch_shapes=[pltpu.VMEM((rows, 1), jnp.float32)],
            ),
            compiler_params=pltpu.CompilerParams(
                dimension_semantics=("parallel",),
                vmem_limit_bytes=_VMEM_LIMIT),
        )(x, wd, bd, wu, bu)
        return out.reshape(N, C, H, W)

    # ------------------------------------------------------------------ tiled
    # Pad the spatial axis to a 128-lane multiple; the zeros contribute nothing
    # to the pooled sum (inv_hw uses the true HW) and are sliced away at the end.
    hw_pad = _round_up(HW, hw_tile if hw_tile is not None else _LANE)
    if hw_pad != HW:
        x = jnp.pad(x, ((0, 0), (0, hw_pad - HW)))

    t_pool = hw_tile if hw_tile is not None else _pick_hw_tile(
        hw_pad, C, itemsize, _POOL_X_BUDGET)
    t_apply = hw_tile if hw_tile is not None else _pick_hw_tile(
        hw_pad, C, itemsize, _APPLY_X_BUDGET)
    nb_pool = _pick_nb(N, C, t_pool, itemsize, _POOL_X_BUDGET)
    nb_apply = _pick_nb(N, C, t_apply, itemsize, _APPLY_X_BUDGET)
    rows_p = nb_pool * C
    rows_a = nb_apply * C

    # Pass 1: pooled mean over HW tiles (f32 accumulator across the HW axis).
    pooled_col = pl.pallas_call(
        functools.partial(_se_pool_kernel, inv_hw=inv_hw),
        out_shape=jax.ShapeDtypeStruct((N * C, 1), jnp.float32),
        grid_spec=pltpu.PrefetchScalarGridSpec(
            num_scalar_prefetch=0,
            grid=(N // nb_pool, hw_pad // t_pool),
            in_specs=[pl.BlockSpec((rows_p, t_pool), lambda n, h: (n, h))],
            out_specs=pl.BlockSpec((rows_p, 1), lambda n, h: (n, 0)),
            scratch_shapes=[pltpu.VMEM((rows_p, 1), jnp.float32)],
        ),
        compiler_params=pltpu.CompilerParams(
            dimension_semantics=("parallel", "arbitrary"),   # HW axis accumulates
            vmem_limit_bytes=_VMEM_LIMIT),
    )(x)

    # Tiny excitation (O(N*C*I) flops) in plain XLA between the two passes.
    pooled = pooled_col.reshape(N, C)
    h = pooled @ w_down.astype(jnp.float32).T + b_down.astype(jnp.float32)
    h = jnp.where(h >= 0.0, h, 0.01 * h)
    s = jax.nn.sigmoid(h @ w_up.astype(jnp.float32).T + b_up.astype(jnp.float32))
    s_col = s.reshape(N * C, 1)                                # (N*C, 1) f32

    # Pass 2: stream tiles and broadcast-scale (pure mem-bound, native dtype).
    out = pl.pallas_call(
        _se_apply_kernel,
        out_shape=jax.ShapeDtypeStruct((N * C, hw_pad), x.dtype),
        grid_spec=pltpu.PrefetchScalarGridSpec(
            num_scalar_prefetch=0,
            grid=(N // nb_apply, hw_pad // t_apply),
            in_specs=[
                pl.BlockSpec((rows_a, t_apply), lambda n, h: (n, h)),
                pl.BlockSpec((rows_a, 1), lambda n, h: (n, 0)),
            ],
            out_specs=pl.BlockSpec((rows_a, t_apply), lambda n, h: (n, h)),
        ),
        compiler_params=pltpu.CompilerParams(
            dimension_semantics=("parallel", "parallel"),
            vmem_limit_bytes=_VMEM_LIMIT),
    )(x, s_col)
    if hw_pad != HW:
        out = out[:, :HW]
    return out.reshape(N, C, H, W)


# ----------------------------------------------------------------------------
# Pure-JAX reference (mirrors the PyTorch SEBlock.forward)
# ----------------------------------------------------------------------------
def se_block_reference(x_nchw, w_down, b_down, w_up, b_up):
    pooled = jnp.mean(x_nchw.astype(jnp.float32), axis=(2, 3))           # (N, C)
    h = pooled @ w_down.T + b_down                                       # (N, I)
    h = jnp.where(h >= 0, h, 0.01 * h)
    s = jax.nn.sigmoid(h @ w_up.T + b_up)                                # (N, C)
    return (x_nchw.astype(jnp.float32) * s[:, :, None, None]).astype(x_nchw.dtype)


if __name__ == "__main__":
    # ---- Test 1: small shapes consistent with the module (fused path) ------
    N, C, INTERNAL, H, W = 2, 4, 2, 16, 16
    key = jax.random.PRNGKey(0)
    kx, kwd, kbd, kwu, kbu = jax.random.split(key, 5)

    x = jax.random.normal(kx, (N, C, H, W), dtype=jnp.float32)
    # Conv2d(k=1) weights are (out, in, 1, 1) in PyTorch -> stored as (out, in).
    w_down = jax.random.normal(kwd, (INTERNAL, C), dtype=jnp.float32) * 0.5
    b_down = jax.random.normal(kbd, (INTERNAL,), dtype=jnp.float32) * 0.1
    w_up = jax.random.normal(kwu, (C, INTERNAL), dtype=jnp.float32) * 0.5
    b_up = jax.random.normal(kbu, (C,), dtype=jnp.float32) * 0.1

    out = jax.block_until_ready(se_block(x, w_down, b_down, w_up, b_up))
    ref = se_block_reference(x, w_down, b_down, w_up, b_up)
    assert out.shape == (N, C, H, W)
    assert jnp.allclose(out, ref, atol=1e-5, rtol=1e-5), "fused path mismatch"

    # ---- Test 2: force the HW-tiled two-pass path (accumulator across tiles)
    N2, C2, I2, H2, W2 = 2, 8, 4, 16, 16
    k2 = jax.random.split(jax.random.PRNGKey(0), 5)
    x2 = jax.random.normal(k2[0], (N2, C2, H2, W2), dtype=jnp.float32)
    wd2 = jax.random.normal(k2[1], (I2, C2), dtype=jnp.float32) * 0.5
    bd2 = jax.random.normal(k2[2], (I2,), dtype=jnp.float32) * 0.1
    wu2 = jax.random.normal(k2[3], (C2, I2), dtype=jnp.float32) * 0.5
    bu2 = jax.random.normal(k2[4], (C2,), dtype=jnp.float32) * 0.1

    out2 = jax.block_until_ready(
        se_block(x2, wd2, bd2, wu2, bu2, force_tiled=True, hw_tile=128))
    ref2 = se_block_reference(x2, wd2, bd2, wu2, bu2)
    assert out2.shape == (N2, C2, H2, W2)
    assert jnp.allclose(out2, ref2, atol=1e-5, rtol=1e-5), "tiled path mismatch"

    # ---- Test 3: tiled path with a non-128-multiple spatial size (padding) --
    N3, C3, I3, H3, W3 = 2, 8, 4, 10, 10
    k3 = jax.random.split(jax.random.PRNGKey(0), 5)
    x3 = jax.random.normal(k3[0], (N3, C3, H3, W3), dtype=jnp.float32)
    wd3 = jax.random.normal(k3[1], (I3, C3), dtype=jnp.float32) * 0.5
    bd3 = jax.random.normal(k3[2], (I3,), dtype=jnp.float32) * 0.1
    wu3 = jax.random.normal(k3[3], (C3, I3), dtype=jnp.float32) * 0.5
    bu3 = jax.random.normal(k3[4], (C3,), dtype=jnp.float32) * 0.1

    out3 = jax.block_until_ready(
        se_block(x3, wd3, bd3, wu3, bu3, force_tiled=True))
    ref3 = se_block_reference(x3, wd3, bd3, wu3, bu3)
    assert out3.shape == (N3, C3, H3, W3)
    assert jnp.allclose(out3, ref3, atol=1e-5, rtol=1e-5), "padded tiled mismatch"

    print("KERNEL_OK")
</pallas_src>

<mosaic_0001>
module attributes {stable_mosaic.version = 11 : i64} {
  func.func @_se_fused_kernel(%arg0: i32, %arg1: memref<8x256xf32, #tpu.memory_space<vmem>>, %arg2: memref<2x4xf32, #tpu.memory_space<vmem>>, %arg3: memref<2x1xf32, #tpu.memory_space<vmem>>, %arg4: memref<4x2xf32, #tpu.memory_space<vmem>>, %arg5: memref<4x1xf32, #tpu.memory_space<vmem>>, %arg6: memref<8x256xf32, #tpu.memory_space<vmem>>, %arg7: memref<8x1xf32, #tpu.memory_space<vmem>>) attributes {dimension_semantics = [#tpu.dimension_semantics<parallel>], iteration_bounds = array<i64: 1>, scalar_prefetch = 0 : i64, scratch_operands = 1 : i64, tpu.core_type = #tpu.core_type<tc>, window_params = [{transform_indices = @transform_0, window_bounds = array<i64: 8, 256>}, {pipeline_mode = #tpu.pipeline_mode<synchronous>, transform_indices = @transform_1, window_bounds = array<i64: 2, 4>}, {pipeline_mode = #tpu.pipeline_mode<synchronous>, transform_indices = @transform_2, window_bounds = array<i64: 2, 1>}, {pipeline_mode = #tpu.pipeline_mode<synchronous>, transform_indices = @transform_3, window_bounds = array<i64: 4, 2>}, {pipeline_mode = #tpu.pipeline_mode<synchronous>, transform_indices = @transform_4, window_bounds = array<i64: 4, 1>}, {transform_indices = @transform_5, window_bounds = array<i64: 8, 256>}]} {
    %c0 = arith.constant 0 : index
    %c0_0 = arith.constant 0 : index
    %0 = vector.load %arg1[%c0, %c0_0] : memref<8x256xf32, #tpu.memory_space<vmem>>, vector<8x256xf32>
    %cst = arith.constant dense<0.000000e+00> : vector<8xf32>
    %1 = vector.multi_reduction <add>, %0, %cst [1] : vector<8x256xf32> to vector<8xf32>
    %2 = vector.shape_cast %1 : vector<8xf32> to vector<8x1xf32>
    %cst_1 = arith.constant 3.906250e-03 : f32
    %3 = vector.broadcast %cst_1 : f32 to vector<8x1xf32>
    %4 = arith.mulf %2, %3 : vector<8x1xf32>
    %5 = vector.extract_strided_slice %4 {offsets = [0, 0], sizes = [4, 1], strides = [1, 1]} : vector<8x1xf32> to vector<4x1xf32>
    %c0_2 = arith.constant 0 : index
    %c0_3 = arith.constant 0 : index
    %6 = vector.load %arg2[%c0_2, %c0_3] : memref<2x4xf32, #tpu.memory_space<vmem>>, vector<2x4xf32>
    %cst_4 = arith.constant dense<0.000000e+00> : vector<2x1xf32>
    %7 = tpu.matmul %6, %5, %cst_4 {dimension_numbers = #tpu.dot_dimension_numbers<[1], [0], [0], [1], [0, 0, 1, 1], [], []>} : vector<2x4xf32>, vector<4x1xf32>, vector<2x1xf32> -> vector<2x1xf32>
    %c0_5 = arith.constant 0 : index
    %c0_6 = arith.constant 0 : index
    %8 = vector.load %arg3[%c0_5, %c0_6] : memref<2x1xf32, #tpu.memory_space<vmem>>, vector<2x1xf32>
    %9 = arith.addf %7, %8 : vector<2x1xf32>
    %cst_7 = arith.constant 0.000000e+00 : f32
    %10 = vector.broadcast %cst_7 : f32 to vector<2x1xf32>
    %11 = arith.cmpf oge, %9, %10 : vector<2x1xf32>
    %cst_8 = arith.constant 0.00999999977 : f32
    %12 = vector.broadcast %cst_8 : f32 to vector<2x1xf32>
    %13 = arith.mulf %12, %9 : vector<2x1xf32>
    %14 = arith.select %11, %9, %13 : vector<2x1xi1>, vector<2x1xf32>
    %c0_9 = arith.constant 0 : index
    %c0_10 = arith.constant 0 : index
    %15 = vector.load %arg4[%c0_9, %c0_10] : memref<4x2xf32, #tpu.memory_space<vmem>>, vector<4x2xf32>
    %cst_11 = arith.constant dense<0.000000e+00> : vector<4x1xf32>
    %16 = tpu.matmul %15, %14, %cst_11 {dimension_numbers = #tpu.dot_dimension_numbers<[1], [0], [0], [1], [0, 0, 1, 1], [], []>} : vector<4x2xf32>, vector<2x1xf32>, vector<4x1xf32> -> vector<4x1xf32>
    %c0_12 = arith.constant 0 : index
    %c0_13 = arith.constant 0 : index
    %17 = vector.load %arg5[%c0_12, %c0_13] : memref<4x1xf32, #tpu.memory_space<vmem>>, vector<4x1xf32>
    %18 = arith.addf %16, %17 : vector<4x1xf32>
    %19 = arith.negf %18 : vector<4x1xf32>
    %20 = math.exp %19 : vector<4x1xf32>
    %cst_14 = arith.constant 1.000000e+00 : f32
    %21 = vector.broadcast %cst_14 : f32 to vector<4x1xf32>
    %22 = arith.addf %21, %20 : vector<4x1xf32>
    %23 = arith.divf %21, %22 : vector<4x1xf32>
    %c0_15 = arith.constant 0 : index
    %c0_16 = arith.constant 0 : index
    %24 = vector.load %arg7[%c0_15, %c0_16] : memref<8x1xf32, #tpu.memory_space<vmem>>, vector<4x1xf32>
    tpu.vector_store %arg7[%c0_15, %c0_16], %23 {strides = array<i32>} : memref<8x1xf32, #tpu.memory_space<vmem>>, vector<4x1xf32>,
    %25 = vector.extract_strided_slice %4 {offsets = [4, 0], sizes = [4, 1], strides = [1, 1]} : vector<8x1xf32> to vector<4x1xf32>
    %c0_17 = arith.constant 0 : index
    %c0_18 = arith.constant 0 : index
    %26 = vector.load %arg2[%c0_17, %c0_18] : memref<2x4xf32, #tpu.memory_space<vmem>>, vector<2x4xf32>
    %cst_19 = arith.constant dense<0.000000e+00> : vector<2x1xf32>
    %27 = tpu.matmul %26, %25, %cst_19 {dimension_numbers = #tpu.dot_dimension_numbers<[1], [0], [0], [1], [0, 0, 1, 1], [], []>} : vector<2x4xf32>, vector<4x1xf32>, vector<2x1xf32> -> vector<2x1xf32>
    %c0_20 = arith.constant 0 : index
    %c0_21 = arith.constant 0 : index
    %28 = vector.load %arg3[%c0_20, %c0_21] : memref<2x1xf32, #tpu.memory_space<vmem>>, vector<2x1xf32>
    %29 = arith.addf %27, %28 : vector<2x1xf32>
    %cst_22 = arith.constant 0.000000e+00 : f32
    %30 = vector.broadcast %cst_22 : f32 to vector<2x1xf32>
    %31 = arith.cmpf oge, %29, %30 : vector<2x1xf32>
    %cst_23 = arith.constant 0.00999999977 : f32
    %32 = vector.broadcast %cst_23 : f32 to vector<2x1xf32>
    %33 = arith.mulf %32, %29 : vector<2x1xf32>
    %34 = arith.select %31, %29, %33 : vector<2x1xi1>, vector<2x1xf32>
    %c0_24 = arith.constant 0 : index
    %c0_25 = arith.constant 0 : index
    %35 = vector.load %arg4[%c0_24, %c0_25] : memref<4x2xf32, #tpu.memory_space<vmem>>, vector<4x2xf32>
    %cst_26 = arith.constant dense<0.000000e+00> : vector<4x1xf32>
    %36 = tpu.matmul %35, %34, %cst_26 {dimension_numbers = #tpu.dot_dimension_numbers<[1], [0], [0], [1], [0, 0, 1, 1], [], []>} : vector<4x2xf32>, vector<2x1xf32>, vector<4x1xf32> -> vector<4x1xf32>
    %c0_27 = arith.constant 0 : index
    %c0_28 = arith.constant 0 : index
    %37 = vector.load %arg5[%c0_27, %c0_28] : memref<4x1xf32, #tpu.memory_space<vmem>>, vector<4x1xf32>
    %38 = arith.addf %36, %37 : vector<4x1xf32>
    %39 = arith.negf %38 : vector<4x1xf32>
    %40 = math.exp %39 : vector<4x1xf32>
    %cst_29 = arith.constant 1.000000e+00 : f32
    %41 = vector.broadcast %cst_29 : f32 to vector<4x1xf32>
    %42 = arith.addf %41, %40 : vector<4x1xf32>
    %43 = arith.divf %41, %42 : vector<4x1xf32>
    %c4 = arith.constant 4 : index
    %c0_30 = arith.constant 0 : index
    %44 = vector.load %arg7[%c4, %c0_30] : memref<8x1xf32, #tpu.memory_space<vmem>>, vector<4x1xf32>
    tpu.vector_store %arg7[%c4, %c0_30], %43 {strides = array<i32>} : memref<8x1xf32, #tpu.memory_space<vmem>>, vector<4x1xf32>,
    %c0_31 = arith.constant 0 : index
    %c0_32 = arith.constant 0 : index
    %45 = vector.load %arg7[%c0_31, %c0_32] : memref<8x1xf32, #tpu.memory_space<vmem>>, vector<8x1xf32>
    %46 = vector.broadcast %45 : vector<8x1xf32> to vector<8x256xf32>
    %47 = arith.mulf %0, %46 : vector<8x256xf32>
    %c0_33 = arith.constant 0 : index
    %c0_34 = arith.constant 0 : index
    %48 = vector.load %arg6[%c0_33, %c0_34] : memref<8x256xf32, #tpu.memory_space<vmem>>, vector<8x256xf32>
    tpu.vector_store %arg6[%c0_33, %c0_34], %47 {strides = array<i32>} : memref<8x256xf32, #tpu.memory_space<vmem>>, vector<8x256xf32>,
    return
  }
  func.func @transform_0(%arg0: i32) -> (i32, i32) {
    %c0_i32 = arith.constant 0 : i32
    %c0_i32_0 = arith.constant 0 : i32
    return %arg0, %c0_i32 : i32, i32
  }
  func.func @transform_1(%arg0: i32) -> (i32, i32) {
    %c0_i32 = arith.constant 0 : i32
    %c0_i32_0 = arith.constant 0 : i32
    %c0_i32_1 = arith.constant 0 : i32
    return %c0_i32, %c0_i32_0 : i32, i32
  }
  func.func @transform_2(%arg0: i32) -> (i32, i32) {
    %c0_i32 = arith.constant 0 : i32
    %c0_i32_0 = arith.constant 0 : i32
    %c0_i32_1 = arith.constant 0 : i32
    return %c0_i32, %c0_i32_0 : i32, i32
  }
  func.func @transform_3(%arg0: i32) -> (i32, i32) {
    %c0_i32 = arith.constant 0 : i32
    %c0_i32_0 = arith.constant 0 : i32
    %c0_i32_1 = arith.constant 0 : i32
    return %c0_i32, %c0_i32_0 : i32, i32
  }
  func.func @transform_4(%arg0: i32) -> (i32, i32) {
    %c0_i32 = arith.constant 0 : i32
    %c0_i32_0 = arith.constant 0 : i32
    %c0_i32_1 = arith.constant 0 : i32
    return %c0_i32, %c0_i32_0 : i32, i32
  }
  func.func @transform_5(%arg0: i32) -> (i32, i32) {
    %c0_i32 = arith.constant 0 : i32
    %c0_i32_0 = arith.constant 0 : i32
    return %arg0, %c0_i32 : i32, i32
  }
}

</mosaic_0001>

<bundles_post_ra>
// kernel: se_block.1
= control target key start
LH: loop header
LB: loop body
LE: loop exit
PB: predicated region body
PF: predicated region fallthrough
CT: control target
= control target key end

     0   :  { %v427_v3 = vmov 0.0   ;;  %vm428_vm0 = vmmov 0   ;;  %vm32_vm1 = vcmask 1043456   ;;  %vm28_vm2 = vcmask 31744   ;;  %s508_s0 = inlined_call_operand.vmem [shape: f32[8,256], index: 0, kind: input, shape index: {}]   ;;  %s509_s1 = inlined_call_operand.vmem [shape: f32[2,4], index: 1, kind: input, shape index: {}]   ;;  %s510_s2 = inlined_call_operand.vmem [shape: f32[2,1], index: 2, kind: input, shape index: {}]   ;;  %s511_s3 = inlined_call_operand.vmem [shape: f32[4,2], index: 3, kind: input, shape index: {}]   ;;  %s512_s4 = inlined_call_operand.vmem [shape: f32[4,1], index: 4, kind: input, shape index: {}]   ;;  %s513_s5 = inlined_call_operand.vmem [shape: f32[8,256], index: 5, kind: output, shape index: {}]  }
   0x1   :  { %v463_v0 = vld [vmem:[%s508_s0] sm:$0xff]  ;;  %v468_v1 = vld [vmem:[%s508_s0 + $0x8] sm:$0xff]  ;;  %395 = vmatprep.subr.mxu0 %v427_v3  ;;  %400 = vmatprep.subr.mxu1 %v427_v3  ;;  %vm115_vm4 = vcmask 1041408   ;;  %vm111_vm5 = vcmask 15360   ;;  %v429_v23 = vmov 0   ;;  %vm195_vm7 = vcmask 3072  }
   0x2   :  { %v22_v2 = vadd.f32 %v468_v1, %v463_v0  ;;  %397 = vmatprep.mubr.msk.f32.mxu0 %vm428_vm0, %v427_v3  ;;  %402 = vmatprep.mubr.msk.f32.mxu1 %vm428_vm0, %v427_v3  ;;  %v26_v6 = vld [vmem:[%s509_s1] sm:$0x3] }
   0x3   :  { %v197_v8 = vld [vmem:[%s509_s1] sm:$0x3]  ;;  %418 = vset.pattern.permute.xlu0 %v429_v23 }
   0x4   :  { %23 = vadd.xlane.f32.xlu0 %v22_v2  ;;  %v27_v9 = vld [vmem:[%s510_s2] sm:$0x3] }
   0x5   :  { %v198_v13 = vld [vmem:[%s510_s2] sm:$0x3] }
   0x6   :  { %v109_v16 = vld [vmem:[%s511_s3] sm:$0xf] }
   0x7   :  { %v278_v21 = vld [vmem:[%s511_s3] sm:$0xf] }
   0x8   :  { %v110_v24 = vld [vmem:[%s512_s4] sm:$0xf] }
   0x9   :  { %v279_v28 = vld [vmem:[%s512_s4] sm:$0xf] }
  0x91   :  { %v24_v4 = vpop.xlane.xlu0 %23 }
  0x92   :  { %v25_v5 = vmul.f32 0.00390625, %v24_v4 }
  0x94   :  { %v199_v7 = vrot.slane %v25_v5, 4  ;;  %396 = vmatpush3.msk.msra.mxu0 %vm32_vm1, %v25_v5 }
  0x95   :  { %398 = vmatmul.mubr.msk.f32.vlgmr.msra.gmra.mrb[0].mxu0 %vm28_vm2, %v26_v6  ;;  %405 = vmatprep.subr.mxu0 %v427_v3 }
  0x96   :  { %406 = vmatpush3.msk.msra.mxu0 %vm32_vm1, %v199_v7  ;;  %407 = vmatprep.mubr.msk.f32.mxu0 %vm428_vm0, %v427_v3 }
  0x99   :  { %408 = vmatmul.mubr.msk.f32.vlgmr.msra.gmra.mrb[2].mxu0 %vm28_vm2, %v197_v8 }
 0x168   :  { %v102_v10 = vpop.f32.mrb[0].mxu0 }
 0x169   :  { %v103_v11 = vadd.f32 %v102_v10, %v27_v9  ;;  %v399_v12 = vpop.f32.mrb[1].mxu0 }
 0x16b   :  { %v107_v14 = vmul.f32 0.01, %v103_v11  ;;  %vm106_vm3 = vcmp.ge.f32.partialorder %v103_v11, 0.0 }
 0x16c   :  { %v271_v15 = vpop.f32.mrb[2].mxu0 }
 0x16d   :  { %v272_v17 = vadd.f32 %v271_v15, %v198_v13  ;;  %v409_v18 = vpop.f32.mrb[3].mxu0  ;;  %v108_v19 = vsel %vm106_vm3, %v103_v11, %v107_v14 }
 0x16e   :  { %401 = vmatpush3.msk.msra.mxu1 %vm115_vm4, %v108_v19 }
 0x16f   :  { %vm275_vm6 = vcmp.ge.f32.partialorder %v272_v17, 0.0  ;;  %v276_v20 = vmul.f32 0.01, %v272_v17  ;;  %403 = vmatmul.mubr.msk.f32.vlgmr.msra.gmra.mrb[0].mxu1 %vm111_vm5, %v109_v16  ;;  %410 = vmatprep.subr.mxu1 %v427_v3 }
 0x170   :  { %412 = vmatprep.mubr.msk.f32.mxu1 %vm428_vm0, %v427_v3 }
 0x171   :  { %v277_v22 = vsel %vm275_vm6, %v272_v17, %v276_v20 }
 0x172   :  { %411 = vmatpush3.msk.msra.mxu1 %vm115_vm4, %v277_v22 }
 0x173   :  { %413 = vmatmul.mubr.msk.f32.vlgmr.msra.gmra.mrb[2].mxu1 %vm111_vm5, %v278_v21 }
 0x242   :  { %v185_v25 = vpop.f32.mrb[0].mxu1 }
 0x243   :  { %v186_v26 = vadd.f32 %v185_v25, %v110_v24  ;;  %v404_v27 = vpop.f32.mrb[1].mxu1 }
 0x245   :  { %v381_v29 = vmul.f32 -1.442695, %v186_v26 }
 0x246   :  { %v352_v30 = vpop.f32.mrb[2].mxu1 }
 0x247   :  { %419 = vpow2.f32 %v381_v29  ;;  %v353_v31 = vadd.f32 %v352_v30, %v279_v28  ;;  %v414_v32 = vpop.f32.mrb[3].mxu1 }
 0x249   :  { %v386_v33 = vmul.f32 -1.442695, %v353_v31 }
 0x24b   :  { %421 = vpow2.f32 %v386_v33 }
 0x251   :  { %v420_v34 = vpop.eup %419 }
 0x252   :  { %v192_v35 = vadd.f32 1.0, %v420_v34 }
 0x254   :  { %423 = vrcp.f32 %v192_v35 }
 0x255   :  { %v422_v36 = vpop.eup %421 }
 0x256   :  { %v359_v37 = vadd.f32 1.0, %v422_v36 }
 0x258   :  { %425 = vrcp.f32 %v359_v37 }
 0x25e   :  { %v424_v38 = vpop.eup %423 }
 0x25f   :  { %196 = vst.msk [vmem:[#allocation2] sm:$0xf] %vm195_vm7, %v424_v38 }
 0x262   :  { %v426_v39 = vpop.eup %425 }
 0x263   :  { %362 = vst.msk [vmem:[#allocation2 + $0x4] sm:$0xf] %vm195_vm7, %v426_v39 }
 0x26a   :  { %v363_v40 = vld [vmem:[#allocation2] sm:$0xff] }
 0x26b   :  { %366 = vperm.xlu0 %418, %v363_v40  }
 0x2ea   :  { %v367_v41 = vpop.permute.xlu0 %366 }
 0x2eb   :  { %v369_v42 = vmul.f32 %v367_v41, %v463_v0  ;;  %v370_v43 = vmul.f32 %v367_v41, %v468_v1 }
 0x2ed   :  { %371 = vst [vmem:[%s513_s5] sm:$0xff] %v369_v42  ;;  %372 = vst [vmem:[%s513_s5 + $0x8] sm:$0xff] %v370_v43 }

</bundles_post_ra>
